<compile_context>
chip_gen: v6e
topology: v6e:2x2x1
jax: 0.10.0
libtpu: 0.0.40
codegen_flags: <defaults>
</compile_context>

<pallas_src>
import functools
import math

import jax
import jax.numpy as jnp
from jax import lax
from jax.experimental import pallas as pl
from jax.experimental.pallas import tpu as pltpu


# ----------------------------------------------------------------------------
# Fused kernel: one grid step == `block_n` batch elements.
# ----------------------------------------------------------------------------
def _fedtpg_kernel(text_ref, a_ref, vo_ref, cb_ref,
                   w1_ref, b1_ref, w2_ref, b2_ref, out_ref,
                   *, num_heads, block_n):
    f32 = jnp.float32
    cdt = a_ref.dtype                       # MXU operand dtype (bf16 or f32)
    H = num_heads
    L = a_ref.shape[0] // H                 # prompt length
    E = vo_ref.shape[2]                     # embed dim
    S = text_ref.shape[1]                   # source sequence length

    a_w = a_ref[...]                        # (H*L, KV) fused score weights

    # Batched fused value/out-proj path: one (block_n*S, KV) @ (KV, E) matmul
    # per head (fills MXU rows across the whole step's batch).
    x_all = text_ref[...].reshape(block_n * S, text_ref.shape[2])   # (Nb*S, KV)
    xvo = [jnp.dot(x_all, vo_ref[h], preferred_element_type=f32).astype(cdt)
           for h in range(H)]                                        # H x (Nb*S, E)

    attn_rows = []
    for b in range(block_n):                # static unroll over batch elems
        x_b = x_all[b * S:(b + 1) * S, :]   # (S, KV), 8-aligned sublane slice
        # scores[(h,l), j] = sum_c A[(h,l), c] * x[j, c]   (q.k^T pattern).
        # Key-path bias omitted: constant per row -> softmax shift-invariant.
        s = lax.dot_general(a_w, x_b, (((1,), (1,)), ((), ())),
                            preferred_element_type=f32)              # (H*L, S)
        s = s - jnp.max(s, axis=-1, keepdims=True)
        e = jnp.exp(s)
        inv = pl.reciprocal(jnp.sum(e, axis=-1, keepdims=True), approx=True)
        p = (e * inv).astype(cdt)                                     # (H*L, S)

        acc = jnp.zeros((L, E), f32)
        for h in range(H):                  # static unroll; sublane slices only
            acc = acc + jnp.dot(p[h * L:(h + 1) * L, :],
                                xvo[h][b * S:(b + 1) * S, :],
                                preferred_element_type=f32)           # (L, E)
        attn_rows.append(acc)

    attn = attn_rows[0] if block_n == 1 else jnp.concatenate(attn_rows, axis=0)
    attn = attn + cb_ref[...]               # fused value-bias@Wo + out-proj bias

    # LayerNorm (eps=1e-5); affine already folded into w1/b1.
    mu = jnp.mean(attn, axis=-1, keepdims=True)
    xc = attn - mu
    var = jnp.mean(xc * xc, axis=-1, keepdims=True)
    xn = xc * lax.rsqrt(var + 1e-5)

    # MLP: Linear -> ReLU -> Linear (operands in compute dtype, f32 accum).
    h1 = jnp.dot(xn.astype(cdt), w1_ref[...],
                 preferred_element_type=f32) + b1_ref[...]
    h1 = jnp.maximum(h1, 0.0)
    y = jnp.dot(h1.astype(cdt), w2_ref[...],
                preferred_element_type=f32) + b2_ref[...]
    out_ref[...] = y.astype(out_ref.dtype)  # (Nb*L, E)
    # TODO(synk): if profiling ever shows a store-bound epilogue, present the
    # output lane-dense as (Nb, L*E) instead of a 32-lane last dim.


# ----------------------------------------------------------------------------
# Wrapper-side algebraic fusion of the stacked linear layers (batch-invariant).
# ----------------------------------------------------------------------------
def _prepare_fused_params(params, compute_dtype):
    f32 = jnp.float32
    L, E = params["query"].shape
    KV = params["kp_w"].shape[0]
    H = params["num_heads"]
    dh = E // H

    # Hoisted, pre-scaled query projection (batch-invariant).
    q = (params["query"] @ params["wq"] + params["bq"]) / math.sqrt(dh)   # (L, E)
    # Fused key path (key_proj then Wk); its bias is dropped (softmax shift-inv).
    kwf = params["kp_w"] @ params["wk"]                                   # (KV, E)
    # A[(h,l), c] = sum_d q[l, h*dh+d] * kwf[c, h*dh+d]
    a = jnp.einsum("lhd,chd->hlc",
                   q.reshape(L, H, dh),
                   kwf.reshape(KV, H, dh)).reshape(H * L, KV)

    # Fused value path (value_proj, Wv, Wo) per head.
    vwf = params["vp_w"] @ params["wv"]                                   # (KV, E)
    vbf = params["vp_b"] @ params["wv"] + params["bv"]                    # (1, E)
    vo = jnp.einsum("hcd,hde->hce",
                    vwf.reshape(KV, H, dh).transpose(1, 0, 2),
                    params["wo"].reshape(H, dh, E))                       # (H, KV, E)
    cbias = vbf @ params["wo"] + params["bo"]                             # (1, E)

    # Fold LayerNorm affine into the first MLP linear.
    w1f = params["ln_g"].reshape(E, 1) * params["w1"]
    b1f = params["ln_b"] @ params["w1"] + params["b1"]

    return dict(
        a=a.astype(compute_dtype),
        vo=vo.astype(compute_dtype),
        cbias=cbias.astype(f32),
        w1=w1f.astype(compute_dtype), b1=b1f.astype(f32),
        w2=params["w2"].astype(compute_dtype), b2=params["b2"].astype(f32),
    )


# ----------------------------------------------------------------------------
# Forward wrapper
# ----------------------------------------------------------------------------
def fedtpg_forward(params, text_embeddings, compute_dtype=jnp.bfloat16):
    """text_embeddings: (S, N, kv_dim)  ->  prompt_vectors: (N, L, embed_dim)."""
    S, N, KV = text_embeddings.shape
    L, E = params["query"].shape
    H = params["num_heads"]

    fused = _prepare_fused_params(params, compute_dtype)

    # >= 2 parallel grid steps when N allows (v7x: one per TensorCore); each
    # step processes block_n elements to amortize per-step overhead.
    num_steps = 2 if N >= 2 else 1
    block_n = -(-N // num_steps)            # cdiv
    n_pad = num_steps * block_n

    x = jnp.transpose(text_embeddings, (1, 0, 2)).astype(compute_dtype)  # (N,S,KV)
    if n_pad != N:
        x = jnp.concatenate(
            [x, jnp.zeros((n_pad - N, S, KV), x.dtype)], axis=0)

    def full(arr):
        rank = arr.ndim
        return pl.BlockSpec(arr.shape, lambda n, _r=rank: (0,) * _r)

    out_flat = pl.pallas_call(
        functools.partial(_fedtpg_kernel, num_heads=H, block_n=block_n),
        out_shape=jax.ShapeDtypeStruct((n_pad * L, E), jnp.float32),
        grid=(num_steps,),
        in_specs=[
            pl.BlockSpec((block_n, S, KV), lambda n: (n, 0, 0)),   # text tile
            full(fused["a"]), full(fused["vo"]), full(fused["cbias"]),
            full(fused["w1"]), full(fused["b1"]),
            full(fused["w2"]), full(fused["b2"]),
        ],
        out_specs=pl.BlockSpec((block_n * L, E), lambda n: (n, 0)),
        compiler_params=pltpu.CompilerParams(
            dimension_semantics=("parallel",)),
    )(x, fused["a"], fused["vo"], fused["cbias"],
      fused["w1"], fused["b1"], fused["w2"], fused["b2"])

    return out_flat.reshape(n_pad, L, E)[:N]


# ----------------------------------------------------------------------------
# Parameter init (same spirit as the PyTorch module; weights stored as
# (in_dim, out_dim), i.e. transposed nn.Linear layout).
# ----------------------------------------------------------------------------
def init_params(key, kv_dim, embed_dim, prompt_length, num_heads):
    E, KV, L = embed_dim, kv_dim, prompt_length
    ks = jax.random.split(key, 17)

    def lin(k, fan_in, shape):
        return jax.random.normal(k, shape, jnp.float32) / jnp.sqrt(float(fan_in))

    return dict(
        num_heads=num_heads,
        query=jax.random.normal(ks[0], (L, E), jnp.float32),       # torch.randn
        kp_w=lin(ks[1], KV, (KV, E)), kp_b=lin(ks[2], KV, (1, E)),
        vp_w=lin(ks[3], KV, (KV, E)), vp_b=lin(ks[4], KV, (1, E)),
        wq=lin(ks[5], E, (E, E)), bq=lin(ks[6], E, (1, E)),
        wk=lin(ks[7], E, (E, E)), bk=lin(ks[8], E, (1, E)),
        wv=lin(ks[9], E, (E, E)), bv=lin(ks[10], E, (1, E)),
        wo=lin(ks[11], E, (E, E)), bo=lin(ks[12], E, (1, E)),
        ln_g=jnp.ones((1, E), jnp.float32), ln_b=jnp.zeros((1, E), jnp.float32),
        w1=lin(ks[13], E, (E, E)), b1=lin(ks[14], E, (1, E)),
        w2=lin(ks[15], E, (E, E)), b2=lin(ks[16], E, (1, E)),
    )


# ----------------------------------------------------------------------------
# Pure-JAX reference (mirrors the PyTorch forward, un-fused) for correctness.
# ----------------------------------------------------------------------------
def fedtpg_reference(params, text_embeddings):
    S, N, KV = text_embeddings.shape
    L, E = params["query"].shape
    H = params["num_heads"]
    dh = E // H
    x = jnp.transpose(text_embeddings, (1, 0, 2))                  # (N, S, KV)
    keys0 = x @ params["kp_w"] + params["kp_b"]
    vals0 = x @ params["vp_w"] + params["vp_b"]
    q0 = jnp.broadcast_to(params["query"][None], (N, L, E))
    q = q0 @ params["wq"] + params["bq"]
    k = keys0 @ params["wk"] + params["bk"]
    v = vals0 @ params["wv"] + params["bv"]
    qh = q.reshape(N, L, H, dh).transpose(0, 2, 1, 3)
    kh = k.reshape(N, S, H, dh).transpose(0, 2, 1, 3)
    vh = v.reshape(N, S, H, dh).transpose(0, 2, 1, 3)
    s = jnp.einsum('nhld,nhsd->nhls', qh, kh) / float(dh) ** 0.5
    p = jax.nn.softmax(s, axis=-1)
    ctx = jnp.einsum('nhls,nhsd->nhld', p, vh)
    ctx = ctx.transpose(0, 2, 1, 3).reshape(N, L, E)
    attn_out = ctx @ params["wo"] + params["bo"]
    mu = attn_out.mean(-1, keepdims=True)
    var = ((attn_out - mu) ** 2).mean(-1, keepdims=True)
    xn = (attn_out - mu) / jnp.sqrt(var + 1e-5)
    xn = xn * params["ln_g"] + params["ln_b"]
    h1 = jax.nn.relu(xn @ params["w1"] + params["b1"])
    return h1 @ params["w2"] + params["b2"]


# ----------------------------------------------------------------------------
if __name__ == "__main__":
    kv_dim, embed_dim, prompt_length, num_heads = 64, 32, 8, 4
    seq, batch = 16, 2

    key = jax.random.PRNGKey(0)
    kp, kx = jax.random.split(key)
    params = init_params(kp, kv_dim, embed_dim, prompt_length, num_heads)
    # PyTorch MultiheadAttention default is seq-first: (S, N, kv_dim)
    text = jax.random.normal(kx, (seq, batch, kv_dim), jnp.float32)

    ref = fedtpg_reference(params, text)

    # Full-f32 path: tight validation of the fused-weight algebra.
    out_f32 = jax.block_until_ready(
        fedtpg_forward(params, text, compute_dtype=jnp.float32))
    assert out_f32.shape == (batch, prompt_length, embed_dim), out_f32.shape
    assert bool(jnp.all(jnp.isfinite(out_f32)))
    assert bool(jnp.allclose(out_f32, ref, rtol=5e-3, atol=5e-3)), \
        float(jnp.max(jnp.abs(out_f32 - ref)))

    # bf16-MXU path (default / recommended on v5e, v6e, v7x): operands bf16,
    # f32 accumulation and f32 elementwise math; looser tolerance vs f32 ref.
    out_bf16 = jax.block_until_ready(
        fedtpg_forward(params, text, compute_dtype=jnp.bfloat16))
    assert out_bf16.shape == (batch, prompt_length, embed_dim), out_bf16.shape
    assert bool(jnp.all(jnp.isfinite(out_bf16)))
    assert bool(jnp.allclose(out_bf16, ref, rtol=1e-1, atol=1e-1)), \
        float(jnp.max(jnp.abs(out_bf16 - ref)))

    print("KERNEL_OK")
</pallas_src>

<mosaic_0001>
module attributes {stable_mosaic.version = 11 : i64} {
  func.func @_fedtpg_kernel(%arg0: i32, %arg1: memref<1x16x64xf32, #tpu.memory_space<vmem>>, %arg2: memref<32x64xf32, #tpu.memory_space<vmem>>, %arg3: memref<4x64x32xf32, #tpu.memory_space<vmem>>, %arg4: memref<1x32xf32, #tpu.memory_space<vmem>>, %arg5: memref<32x32xf32, #tpu.memory_space<vmem>>, %arg6: memref<1x32xf32, #tpu.memory_space<vmem>>, %arg7: memref<32x32xf32, #tpu.memory_space<vmem>>, %arg8: memref<1x32xf32, #tpu.memory_space<vmem>>, %arg9: memref<8x32xf32, #tpu.memory_space<vmem>>) attributes {dimension_semantics = [#tpu.dimension_semantics<parallel>], iteration_bounds = array<i64: 2>, scalar_prefetch = 0 : i64, scratch_operands = 0 : i64, tpu.core_type = #tpu.core_type<tc>, window_params = [{transform_indices = @transform_0, window_bounds = array<i64: 1, 16, 64>}, {pipeline_mode = #tpu.pipeline_mode<synchronous>, transform_indices = @transform_1, window_bounds = array<i64: 32, 64>}, {pipeline_mode = #tpu.pipeline_mode<synchronous>, transform_indices = @transform_2, window_bounds = array<i64: 4, 64, 32>}, {pipeline_mode = #tpu.pipeline_mode<synchronous>, transform_indices = @transform_3, window_bounds = array<i64: 1, 32>}, {pipeline_mode = #tpu.pipeline_mode<synchronous>, transform_indices = @transform_4, window_bounds = array<i64: 32, 32>}, {pipeline_mode = #tpu.pipeline_mode<synchronous>, transform_indices = @transform_5, window_bounds = array<i64: 1, 32>}, {pipeline_mode = #tpu.pipeline_mode<synchronous>, transform_indices = @transform_6, window_bounds = array<i64: 32, 32>}, {pipeline_mode = #tpu.pipeline_mode<synchronous>, transform_indices = @transform_7, window_bounds = array<i64: 1, 32>}, {transform_indices = @transform_8, window_bounds = array<i64: 8, 32>}]} {
    %c0 = arith.constant 0 : index
    %c0_0 = arith.constant 0 : index
    %0 = vector.load %arg2[%c0, %c0_0] : memref<32x64xf32, #tpu.memory_space<vmem>>, vector<32x64xf32>
    %c0_1 = arith.constant 0 : index
    %c0_2 = arith.constant 0 : index
    %c0_3 = arith.constant 0 : index
    %1 = vector.load %arg1[%c0_1, %c0_2, %c0_3] : memref<1x16x64xf32, #tpu.memory_space<vmem>>, vector<1x16x64xf32>
    %2 = vector.shape_cast %1 : vector<1x16x64xf32> to vector<16x64xf32>
    %c0_4 = arith.constant 0 : index
    %c0_5 = arith.constant 0 : index
    %c0_6 = arith.constant 0 : index
    %3 = vector.load %arg3[%c0_4, %c0_5, %c0_6] : memref<4x64x32xf32, #tpu.memory_space<vmem>>, vector<1x64x32xf32>
    %4 = vector.shape_cast %3 : vector<1x64x32xf32> to vector<64x32xf32>
    %cst = arith.constant dense<0.000000e+00> : vector<16x32xf32>
    %5 = tpu.matmul %2, %4, %cst {dimension_numbers = #tpu.dot_dimension_numbers<[1], [0], [0], [1], [0, 0, 1, 1], [], []>} : vector<16x64xf32>, vector<64x32xf32>, vector<16x32xf32> -> vector<16x32xf32>
    %c1 = arith.constant 1 : index
    %c0_7 = arith.constant 0 : index
    %c0_8 = arith.constant 0 : index
    %6 = vector.load %arg3[%c1, %c0_7, %c0_8] : memref<4x64x32xf32, #tpu.memory_space<vmem>>, vector<1x64x32xf32>
    %7 = vector.shape_cast %6 : vector<1x64x32xf32> to vector<64x32xf32>
    %cst_9 = arith.constant dense<0.000000e+00> : vector<16x32xf32>
    %8 = tpu.matmul %2, %7, %cst_9 {dimension_numbers = #tpu.dot_dimension_numbers<[1], [0], [0], [1], [0, 0, 1, 1], [], []>} : vector<16x64xf32>, vector<64x32xf32>, vector<16x32xf32> -> vector<16x32xf32>
    %c2 = arith.constant 2 : index
    %c0_10 = arith.constant 0 : index
    %c0_11 = arith.constant 0 : index
    %9 = vector.load %arg3[%c2, %c0_10, %c0_11] : memref<4x64x32xf32, #tpu.memory_space<vmem>>, vector<1x64x32xf32>
    %10 = vector.shape_cast %9 : vector<1x64x32xf32> to vector<64x32xf32>
    %cst_12 = arith.constant dense<0.000000e+00> : vector<16x32xf32>
    %11 = tpu.matmul %2, %10, %cst_12 {dimension_numbers = #tpu.dot_dimension_numbers<[1], [0], [0], [1], [0, 0, 1, 1], [], []>} : vector<16x64xf32>, vector<64x32xf32>, vector<16x32xf32> -> vector<16x32xf32>
    %c3 = arith.constant 3 : index
    %c0_13 = arith.constant 0 : index
    %c0_14 = arith.constant 0 : index
    %12 = vector.load %arg3[%c3, %c0_13, %c0_14] : memref<4x64x32xf32, #tpu.memory_space<vmem>>, vector<1x64x32xf32>
    %13 = vector.shape_cast %12 : vector<1x64x32xf32> to vector<64x32xf32>
    %cst_15 = arith.constant dense<0.000000e+00> : vector<16x32xf32>
    %14 = tpu.matmul %2, %13, %cst_15 {dimension_numbers = #tpu.dot_dimension_numbers<[1], [0], [0], [1], [0, 0, 1, 1], [], []>} : vector<16x64xf32>, vector<64x32xf32>, vector<16x32xf32> -> vector<16x32xf32>
    %cst_16 = arith.constant dense<0.000000e+00> : vector<32x16xf32>
    %15 = tpu.matmul %0, %2, %cst_16 {dimension_numbers = #tpu.dot_dimension_numbers<[1], [1], [0], [0], [0, 0, 1, 0], [], []>} : vector<32x64xf32>, vector<16x64xf32>, vector<32x16xf32> -> vector<32x16xf32>
    %cst_17 = arith.constant dense<0xFF800000> : vector<32xf32>
    %16 = vector.multi_reduction <maximumf>, %15, %cst_17 [1] : vector<32x16xf32> to vector<32xf32>
    %17 = vector.shape_cast %16 : vector<32xf32> to vector<32x1xf32>
    %18 = vector.broadcast %17 : vector<32x1xf32> to vector<32x16xf32>
    %19 = arith.subf %15, %18 : vector<32x16xf32>
    %20 = math.exp %19 : vector<32x16xf32>
    %cst_18 = arith.constant dense<0.000000e+00> : vector<32xf32>
    %21 = vector.multi_reduction <add>, %20, %cst_18 [1] : vector<32x16xf32> to vector<32xf32>
    %22 = vector.shape_cast %21 : vector<32xf32> to vector<32x1xf32>
    %23 = tpu.reciprocal %22 {approx = true} : vector<32x1xf32> -> vector<32x1xf32>
    %24 = vector.broadcast %23 : vector<32x1xf32> to vector<32x16xf32>
    %25 = arith.mulf %20, %24 : vector<32x16xf32>
    %cst_19 = arith.constant 0.000000e+00 : f32
    %26 = vector.broadcast %cst_19 : f32 to vector<8x32xf32>
    %27 = vector.extract_strided_slice %25 {offsets = [0, 0], sizes = [8, 16], strides = [1, 1]} : vector<32x16xf32> to vector<8x16xf32>
    %cst_20 = arith.constant dense<0.000000e+00> : vector<8x32xf32>
    %28 = tpu.matmul %27, %5, %cst_20 {dimension_numbers = #tpu.dot_dimension_numbers<[1], [0], [0], [1], [0, 0, 1, 1], [], []>} : vector<8x16xf32>, vector<16x32xf32>, vector<8x32xf32> -> vector<8x32xf32>
    %29 = arith.addf %26, %28 : vector<8x32xf32>
    %30 = vector.extract_strided_slice %25 {offsets = [8, 0], sizes = [8, 16], strides = [1, 1]} : vector<32x16xf32> to vector<8x16xf32>
    %cst_21 = arith.constant dense<0.000000e+00> : vector<8x32xf32>
    %31 = tpu.matmul %30, %8, %cst_21 {dimension_numbers = #tpu.dot_dimension_numbers<[1], [0], [0], [1], [0, 0, 1, 1], [], []>} : vector<8x16xf32>, vector<16x32xf32>, vector<8x32xf32> -> vector<8x32xf32>
    %32 = arith.addf %29, %31 : vector<8x32xf32>
    %33 = vector.extract_strided_slice %25 {offsets = [16, 0], sizes = [8, 16], strides = [1, 1]} : vector<32x16xf32> to vector<8x16xf32>
    %cst_22 = arith.constant dense<0.000000e+00> : vector<8x32xf32>
    %34 = tpu.matmul %33, %11, %cst_22 {dimension_numbers = #tpu.dot_dimension_numbers<[1], [0], [0], [1], [0, 0, 1, 1], [], []>} : vector<8x16xf32>, vector<16x32xf32>, vector<8x32xf32> -> vector<8x32xf32>
    %35 = arith.addf %32, %34 : vector<8x32xf32>
    %36 = vector.extract_strided_slice %25 {offsets = [24, 0], sizes = [8, 16], strides = [1, 1]} : vector<32x16xf32> to vector<8x16xf32>
    %cst_23 = arith.constant dense<0.000000e+00> : vector<8x32xf32>
    %37 = tpu.matmul %36, %14, %cst_23 {dimension_numbers = #tpu.dot_dimension_numbers<[1], [0], [0], [1], [0, 0, 1, 1], [], []>} : vector<8x16xf32>, vector<16x32xf32>, vector<8x32xf32> -> vector<8x32xf32>
    %38 = arith.addf %35, %37 : vector<8x32xf32>
    %c0_24 = arith.constant 0 : index
    %c0_25 = arith.constant 0 : index
    %39 = vector.load %arg4[%c0_24, %c0_25] : memref<1x32xf32, #tpu.memory_space<vmem>>, vector<1x32xf32>
    %40 = vector.broadcast %39 : vector<1x32xf32> to vector<8x32xf32>
    %41 = arith.addf %38, %40 : vector<8x32xf32>
    %cst_26 = arith.constant dense<0.000000e+00> : vector<8xf32>
    %42 = vector.multi_reduction <add>, %41, %cst_26 [1] : vector<8x32xf32> to vector<8xf32>
    %43 = vector.shape_cast %42 : vector<8xf32> to vector<8x1xf32>
    %cst_27 = arith.constant 3.200000e+01 : f32
    %44 = vector.broadcast %cst_27 : f32 to vector<8x1xf32>
    %45 = arith.divf %43, %44 : vector<8x1xf32>
    %46 = vector.broadcast %45 : vector<8x1xf32> to vector<8x32xf32>
    %47 = arith.subf %41, %46 : vector<8x32xf32>
    %48 = arith.mulf %47, %47 : vector<8x32xf32>
    %cst_28 = arith.constant dense<0.000000e+00> : vector<8xf32>
    %49 = vector.multi_reduction <add>, %48, %cst_28 [1] : vector<8x32xf32> to vector<8xf32>
    %50 = vector.shape_cast %49 : vector<8xf32> to vector<8x1xf32>
    %cst_29 = arith.constant 3.200000e+01 : f32
    %51 = vector.broadcast %cst_29 : f32 to vector<8x1xf32>
    %52 = arith.divf %50, %51 : vector<8x1xf32>
    %cst_30 = arith.constant 9.99999974E-6 : f32
    %53 = vector.broadcast %cst_30 : f32 to vector<8x1xf32>
    %54 = arith.addf %52, %53 : vector<8x1xf32>
    %55 = math.rsqrt %54 : vector<8x1xf32>
    %56 = vector.broadcast %55 : vector<8x1xf32> to vector<8x32xf32>
    %57 = arith.mulf %47, %56 : vector<8x32xf32>
    %c0_31 = arith.constant 0 : index
    %c0_32 = arith.constant 0 : index
    %58 = vector.load %arg5[%c0_31, %c0_32] : memref<32x32xf32, #tpu.memory_space<vmem>>, vector<32x32xf32>
    %cst_33 = arith.constant dense<0.000000e+00> : vector<8x32xf32>
    %59 = tpu.matmul %57, %58, %cst_33 {dimension_numbers = #tpu.dot_dimension_numbers<[1], [0], [0], [1], [0, 0, 1, 1], [], []>} : vector<8x32xf32>, vector<32x32xf32>, vector<8x32xf32> -> vector<8x32xf32>
    %c0_34 = arith.constant 0 : index
    %c0_35 = arith.constant 0 : index
    %60 = vector.load %arg6[%c0_34, %c0_35] : memref<1x32xf32, #tpu.memory_space<vmem>>, vector<1x32xf32>
    %61 = vector.broadcast %60 : vector<1x32xf32> to vector<8x32xf32>
    %62 = arith.addf %59, %61 : vector<8x32xf32>
    %cst_36 = arith.constant 0.000000e+00 : f32
    %63 = vector.broadcast %cst_36 : f32 to vector<8x32xf32>
    %64 = arith.maximumf %62, %63 : vector<8x32xf32>
    %c0_37 = arith.constant 0 : index
    %c0_38 = arith.constant 0 : index
    %65 = vector.load %arg7[%c0_37, %c0_38] : memref<32x32xf32, #tpu.memory_space<vmem>>, vector<32x32xf32>
    %cst_39 = arith.constant dense<0.000000e+00> : vector<8x32xf32>
    %66 = tpu.matmul %64, %65, %cst_39 {dimension_numbers = #tpu.dot_dimension_numbers<[1], [0], [0], [1], [0, 0, 1, 1], [], []>} : vector<8x32xf32>, vector<32x32xf32>, vector<8x32xf32> -> vector<8x32xf32>
    %c0_40 = arith.constant 0 : index
    %c0_41 = arith.constant 0 : index
    %67 = vector.load %arg8[%c0_40, %c0_41] : memref<1x32xf32, #tpu.memory_space<vmem>>, vector<1x32xf32>
    %68 = vector.broadcast %67 : vector<1x32xf32> to vector<8x32xf32>
    %69 = arith.addf %66, %68 : vector<8x32xf32>
    %c0_42 = arith.constant 0 : index
    %c0_43 = arith.constant 0 : index
    %70 = vector.load %arg9[%c0_42, %c0_43] : memref<8x32xf32, #tpu.memory_space<vmem>>, vector<8x32xf32>
    tpu.vector_store %arg9[%c0_42, %c0_43], %69 {strides = array<i32>} : memref<8x32xf32, #tpu.memory_space<vmem>>, vector<8x32xf32>,
    return
  }
  func.func @transform_0(%arg0: i32) -> (i32, i32, i32) {
    %c0_i32 = arith.constant 0 : i32
    %c0_i32_0 = arith.constant 0 : i32
    %c0_i32_1 = arith.constant 0 : i32
    return %arg0, %c0_i32, %c0_i32_0 : i32, i32, i32
  }
  func.func @transform_1(%arg0: i32) -> (i32, i32) {
    %c0_i32 = arith.constant 0 : i32
    %c0_i32_0 = arith.constant 0 : i32
    %c0_i32_1 = arith.constant 0 : i32
    return %c0_i32, %c0_i32_0 : i32, i32
  }
  func.func @transform_2(%arg0: i32) -> (i32, i32, i32) {
    %c0_i32 = arith.constant 0 : i32
    %c0_i32_0 = arith.constant 0 : i32
    %c0_i32_1 = arith.constant 0 : i32
    %c0_i32_2 = arith.constant 0 : i32
    return %c0_i32, %c0_i32_0, %c0_i32_1 : i32, i32, i32
  }
  func.func @transform_3(%arg0: i32) -> (i32, i32) {
    %c0_i32 = arith.constant 0 : i32
    %c0_i32_0 = arith.constant 0 : i32
    %c0_i32_1 = arith.constant 0 : i32
    return %c0_i32, %c0_i32_0 : i32, i32
  }
  func.func @transform_4(%arg0: i32) -> (i32, i32) {
    %c0_i32 = arith.constant 0 : i32
    %c0_i32_0 = arith.constant 0 : i32
    %c0_i32_1 = arith.constant 0 : i32
    return %c0_i32, %c0_i32_0 : i32, i32
  }
  func.func @transform_5(%arg0: i32) -> (i32, i32) {
    %c0_i32 = arith.constant 0 : i32
    %c0_i32_0 = arith.constant 0 : i32
    %c0_i32_1 = arith.constant 0 : i32
    return %c0_i32, %c0_i32_0 : i32, i32
  }
  func.func @transform_6(%arg0: i32) -> (i32, i32) {
    %c0_i32 = arith.constant 0 : i32
    %c0_i32_0 = arith.constant 0 : i32
    %c0_i32_1 = arith.constant 0 : i32
    return %c0_i32, %c0_i32_0 : i32, i32
  }
  func.func @transform_7(%arg0: i32) -> (i32, i32) {
    %c0_i32 = arith.constant 0 : i32
    %c0_i32_0 = arith.constant 0 : i32
    %c0_i32_1 = arith.constant 0 : i32
    return %c0_i32, %c0_i32_0 : i32, i32
  }
  func.func @transform_8(%arg0: i32) -> (i32, i32) {
    %c0_i32 = arith.constant 0 : i32
    %c0_i32_0 = arith.constant 0 : i32
    return %arg0, %c0_i32 : i32, i32
  }
}

</mosaic_0001>

<bundles_post_ra>
// kernel: tpu_custom_call.1
= control target key start
LH: loop header
LB: loop body
LE: loop exit
PB: predicated region body
PF: predicated region fallthrough
CT: control target
= control target key end

     0   :  { %13 = vsyncpa [#allocation3], 0  ;;  %s2109_s0 = inlined_call_operand.vmem [shape: f32[2,16,64], index: 0, kind: input, shape index: {}]   ;;  %s2110_s1 = inlined_call_operand.vmem [shape: f32[32,64], index: 1, kind: input, shape index: {}]   ;;  %s2111_s2 = inlined_call_operand.vmem [shape: f32[4,64,32], index: 2, kind: input, shape index: {}]   ;;  %s2112_s3 = inlined_call_operand.vmem [shape: f32[1,32], index: 3, kind: input, shape index: {}]   ;;  %s2113_s4 = inlined_call_operand.vmem [shape: f32[32,32], index: 4, kind: input, shape index: {}]   ;;  %s2114_s5 = inlined_call_operand.vmem [shape: f32[1,32], index: 5, kind: input, shape index: {}]   ;;  %s2115_s6 = inlined_call_operand.vmem [shape: f32[32,32], index: 6, kind: input, shape index: {}]   ;;  %s2116_s7 = inlined_call_operand.vmem [shape: f32[1,32], index: 7, kind: input, shape index: {}]   ;;  %s2117_s8 = inlined_call_operand.hbm [shape: f32[16,32], index: 8, kind: output, shape index: {}]  }
   0x1   :  { %15 = vsyncpa [#allocation3 + $0x1], 0  ;;  %s1786_s27 = smov 0   ;;  %s1788_s28 = smov 0  }
   0x2   :  { %s1790_s29 = smov 0   ;;  %s1792_s30 = smov 0  }
   0x3 LB: > { %s1807_s9 = sadd.s32 4294967295, %s1736_s30   ;;  %s1354_s10 = sadd.s32 4294967294, %s1736_s30   ;;  %s1736_s30 = sphi %s1792_s30, %s2123_s30   ;;  %s1732_s29 = sphi %s1790_s29, %s2122_s29   ;;  %s1728_s28 = sphi %s1788_s28, %s2121_s28   ;;  %s1724_s27 = sphi %s1786_s27, %s2120_s27  }
   0x4   : > { %s1811_s11 = sadd.s32 1, %s1736_s30   ;;  %s201_s12 = sadd.s32 1, %s1732_s29 }
   0x5   : > { %s198_s13 = ssub.s32 %s1736_s30, %s1811_s11  ;;  %p211_p0 = scmp.ne.s32.totalorder %s1732_s29, %s1728_s28 }
   0x6   : > { %p199_p1 = scmp.eq.s32.totalorder %s198_s13, 0  ;;  %p212_p2 = scmp.eq.s32.totalorder %s1807_s9, 1 }
   0x7   : > { %p217_p3 = scmp.ne.s32.totalorder %s1728_s28, %s1724_s27  ;;  %p218_p4 = scmp.eq.s32.totalorder %s1354_s10, 1 }
   0x8   : > { %s1822_s14 = scalar_select %p199_p1, %s1732_s29, %s201_s12  }
   0x9   : > { %p1824_p5 = por %p212_p2, %p211_p0  ;;  %p1828_p6 = por %p218_p4, %p217_p3 }
   0xa   : > { %p1357_p7 = scmp.ge.s32.totalorder %s1736_s30, 1  ;;  %p265_p8 = scmp.lt.s32.totalorder %s1736_s30, 3 }
   0xc   : > { %p266_p9 = pnand %p1357_p7, %p265_p8 }
   0xd   : > { %p299_p10 = scmp.lt.s32.totalorder (!%p266_p9), %s1807_s9, 1  ;;  %s1409_s10 = sshll.u32 (!%p266_p9), %s1807_s9, 7 }
   0xe   : > { %269 = sbr.rel (%p266_p9) target bundleno = 1481 (0x5c9), region = 52  ;;  %s2073_s19 = scalar_lea.hbm (!%p266_p9), %s2117_s8, %s1409_s10 }
  0x13   : > { %v317_v0 = vld [vmem:[%s2111_s2 + $0x38] sm:$0xff]  ;;  %v316_v1 = vld [vmem:[%s2111_s2 + $0x30] sm:$0xff]  ;;  %v315_v2 = vld [vmem:[%s2111_s2 + $0x28] sm:$0xff]  ;;  %s300_s23 = scalar_select %p299_p10, %s1807_s9, 1  ;;  %vm318_vm0 = vcmask 523264   ;;  %vm749_vm1 = vcmask 130048  }
  0x14   : > { %1481 = vmatprep.subr.mxu0 %v317_v0  ;;  %v314_v3 = vld [vmem:[%s2111_s2 + $0x20] sm:$0xff]  ;;  %v313_v4 = vld [vmem:[%s2111_s2 + $0x18] sm:$0xff]  ;;  %v312_v6 = vld [vmem:[%s2111_s2 + $0x10] sm:$0xff]  ;;  %vm1739_vm2 = vmmov 0   ;;  %vm1096_vm3 = vcmask 261120   ;;  %s1740_s9 = smov [#allocation2]  }
  0x15   : > { %1482 = vmatpush3.msra.mxu0 %v317_v0  ;;  %s1412_s26 = sshll.u32 %s300_s23, 4  ;;  %v311_v7 = vld [vmem:[%s2111_s2 + $0x8] sm:$0xff]  ;;  %v310_v8 = vld [vmem:[%s2111_s2] sm:$0xff]  ;;  %v1380_v10 = vld [vmem:[%s2111_s2 + $0xb8] sm:$0xff]  ;;  %s296_s23 = sand.u32 1, %s1728_s28  }
  0x16   : > { %1483 = vmatprep.subr.mxu0 %v316_v1  ;;  %s303_s13 = scalar_lea.vmem %s2109_s0, %s1412_s26  ;;  %v1379_v11 = vld [vmem:[%s2111_s2 + $0xb0] sm:$0xff]  ;;  %v1378_v12 = vld [vmem:[%s2111_s2 + $0xa8] sm:$0xff]  ;;  %v1377_v13 = vld [vmem:[%s2111_s2 + $0xa0] sm:$0xff]  ;;  %s1358_s24 = sshll.u32 %s296_s23, 3 }
  0x17   : > { %1484 = vmatpush3.msra.mxu0 %v316_v1  ;;  %v1854_v5 = vld [vmem:[%s303_s13] sm:$0xff]  ;;  %v1869_v9 = vld [vmem:[%s303_s13 + $0x8] sm:$0xff]  ;;  %v1376_v14 = vld [vmem:[%s2111_s2 + $0x98] sm:$0xff]  ;;  %s298_s12 = scalar_lea.vmem [#allocation2], %s1358_s24  ;;  %s1282_s20 = scalar_lea.sflag [#allocation3], %s296_s23 }
  0x18   : > { %1485 = vmatprep.subr.mxu0 %v315_v2  ;;  %1497 = vmatprep.mubr.msk.f32.mxu0 %vm318_vm0, %v1854_v5  ;;  %v1375_v15 = vld [vmem:[%s2111_s2 + $0x90] sm:$0xff]  ;;  %v1374_v16 = vld [vmem:[%s2111_s2 + $0x88] sm:$0xff]  ;;  %v1373_v17 = vld [vmem:[%s2111_s2 + $0x80] sm:$0xff]  ;;  %s1295_s17 = sshll.u32 %s298_s12, 4  ;;  %s1680_s22 = sshll.u32 %s1740_s9, 4  ;;  %s1296_s17 = int_to_ptr.vmem [resolvable:$true] %s1295_s17  ;;  %s1681_s22 = int_to_ptr.vmem [resolvable:$false] %s1680_s22 }
  0x19   : > { %1486 = vmatpush3.msra.mxu0 %v315_v2  ;;  %1516 = vmatprep.mubr.msk.f32.mxu1 %vm318_vm0, %v1854_v5  ;;  %v304_v18 = vld [vmem:[%s2110_s1] sm:$0xff]  ;;  %v305_v19 = vld [vmem:[%s2110_s1 + $0x8] sm:$0xff]  ;;  %v306_v20 = vld [vmem:[%s2110_s1 + $0x10] sm:$0xff]  ;;  %s1676_s21 = scalar_lea.vmem %s1296_s17, 128  ;;  %s1682_s24 = scalar_lea.vmem %s1681_s22, 256 }
  0x1a   : > { %1487 = vmatprep.subr.mxu0 %v314_v3  ;;  %v307_v21 = vld [vmem:[%s2110_s1 + $0x18] sm:$0xff]  ;;  %v1369_v23 = vld [vmem:[%s2111_s2 + $0x70] sm:$0xff]  ;;  %v1368_v24 = vld [vmem:[%s2111_s2 + $0x68] sm:$0xff]  ;;  %p1677_p11 = scmp.ne.s32.totalorder %s1296_s17, %s1676_s21  ;;  %p1683_p0 = scmp.lt.s32.totalorder %s1296_s17, %s1681_s22 }
  0x1b   : > { %1488 = vmatpush3.msra.mxu0 %v314_v3  ;;  %v1370_v22 = vld [vmem:[%s2111_s2 + $0x78] sm:$0xff]  ;;  %v1367_v25 = vld [vmem:[%s2111_s2 + $0x60] sm:$0xff]  ;;  %v1365_v27 = vld [vmem:[%s2111_s2 + $0x50] sm:$0xff]  ;;  %p1684_p1 = scmp.lt.s32.totalorder %s1682_s24, %s1676_s21 }
  0x1c   : > { %1489 = vmatprep.subr.mxu0 %v313_v4  ;;  %1500 = vmatprep.subr.mxu1 %v1370_v22  ;;  %v1366_v26 = vld [vmem:[%s2111_s2 + $0x58] sm:$0xff]  ;;  %v1364_v28 = vld [vmem:[%s2111_s2 + $0x48] sm:$0xff]  ;;  %v1363_v29 = vld [vmem:[%s2111_s2 + $0x40] sm:$0xff]  ;;  %p1678_p12 = pnand %p1677_p11, %p1824_p5 }
  0x1d   : > { %1490 = vmatpush3.msra.mxu0 %v313_v4  ;;  %1501 = vmatpush3.msra.mxu1 %v1370_v22  ;;  %v1390_v30 = vld [vmem:[%s2111_s2 + $0xf8] sm:$0xff]  ;;  %v1389_v31 = vld [vmem:[%s2111_s2 + $0xf0] sm:$0xff]  ;;  %v1388_v32 = vld [vmem:[%s2111_s2 + $0xe8] sm:$0xff]  ;;  %p1685_p2 = por %p1684_p1, %p1683_p0 }
  0x1e   : > { %1491 = vmatprep.subr.mxu0 %v312_v6  ;;  %1502 = vmatprep.subr.mxu1 %v1369_v23  ;;  %v1387_v33 = vld [vmem:[%s2111_s2 + $0xe0] sm:$0xff]  ;;  %v1386_v34 = vld [vmem:[%s2111_s2 + $0xd8] sm:$0xff]  ;;  %v1385_v35 = vld [vmem:[%s2111_s2 + $0xd0] sm:$0xff]  ;;  %p1679_p13 = pneg %p1678_p12 }
  0x1f   : > { %1492 = vmatpush3.msra.mxu0 %v312_v6  ;;  %1503 = vmatpush3.msra.mxu1 %v1369_v23  ;;  %v1384_v36 = vld [vmem:[%s2111_s2 + $0xc8] sm:$0xff]  ;;  %v1383_v37 = vld [vmem:[%s2111_s2 + $0xc0] sm:$0xff] }
  0x20   : > { %1493 = vmatprep.subr.mxu0 %v311_v7  ;;  %1504 = vmatprep.subr.mxu1 %v1368_v24  ;;  %p1686_p3 = pnand %p1685_p2, %p1679_p13 }
  0x21   : > { %1494 = vmatpush3.msra.mxu0 %v311_v7  ;;  %1505 = vmatpush3.msra.mxu1 %v1368_v24  ;;  %v1738_v7 = vmov 0.0  }
  0x22   : > { %1495 = vmatprep.subr.mxu0 %v310_v8  ;;  %1506 = vmatprep.subr.mxu1 %v1367_v25 }
  0x23   : > { %1496 = vmatpush3.msra.mxu0 %v310_v8  ;;  %1507 = vmatpush3.msra.mxu1 %v1367_v25 }
  0x24   : > { %1498 = vmatmul.mubr.msk.f32.vlgmr.msra.gmra.mxu0 %vm318_vm0, %v1869_v9  ;;  %1519 = vmatprep.subr.mxu0 %v1380_v10 }
  0x25   : > { %1520 = vmatpush3.msra.mxu0 %v1380_v10  ;;  %1535 = vmatprep.mubr.msk.f32.mxu0 %vm318_vm0, %v1854_v5 }
  0x26   : > { %1521 = vmatprep.subr.mxu0 %v1379_v11  ;;  %1508 = vmatprep.subr.mxu1 %v1366_v26 }
  0x27   : > { %1522 = vmatpush3.msra.mxu0 %v1379_v11  ;;  %1509 = vmatpush3.msra.mxu1 %v1366_v26 }
  0x28   : > { %1523 = vmatprep.subr.mxu0 %v1378_v12  ;;  %1510 = vmatprep.subr.mxu1 %v1365_v27 }
  0x29   : > { %1524 = vmatpush3.msra.mxu0 %v1378_v12  ;;  %1511 = vmatpush3.msra.mxu1 %v1365_v27 }
  0x2a   : > { %1525 = vmatprep.subr.mxu0 %v1377_v13  ;;  %1512 = vmatprep.subr.mxu1 %v1364_v28 }
  0x2b   : > { %1526 = vmatpush3.msra.mxu0 %v1377_v13  ;;  %1513 = vmatpush3.msra.mxu1 %v1364_v28 }
  0x2c   : > { %1527 = vmatprep.subr.mxu0 %v1376_v14  ;;  %1514 = vmatprep.subr.mxu1 %v1363_v29 }
  0x2d   : > { %1528 = vmatpush3.msra.mxu0 %v1376_v14  ;;  %1515 = vmatpush3.msra.mxu1 %v1363_v29 }
  0x2e   : > { %1529 = vmatprep.subr.mxu0 %v1375_v15  ;;  %1538 = vmatprep.subr.mxu1 %v1390_v30 }
  0x2f   : > { %1530 = vmatpush3.msra.mxu0 %v1375_v15  ;;  %1517 = vmatmul.mubr.msk.f32.vlgmr.msra.gmra.mxu1 %vm318_vm0, %v1869_v9 }
  0x30   : > { %1531 = vmatprep.subr.mxu0 %v1374_v16  ;;  %1539 = vmatpush3.msra.mxu1 %v1390_v30 }
  0x31   : > { %1532 = vmatpush3.msra.mxu0 %v1374_v16  ;;  %1554 = vmatprep.mubr.msk.f32.mxu1 %vm318_vm0, %v1854_v5 }
  0x32   : > { %1533 = vmatprep.subr.mxu0 %v1373_v17  ;;  %1540 = vmatprep.subr.mxu1 %v1389_v31 }
  0x33   : > { %1534 = vmatpush3.msra.mxu0 %v1373_v17  ;;  %1541 = vmatpush3.msra.mxu1 %v1389_v31 }
  0x34   : > { %1536 = vmatmul.mubr.msk.f32.vlgmr.msra.gmra.mxu0 %vm318_vm0, %v1869_v9  ;;  %1557 = vmatprep.subr.msk.mxu0 %vm318_vm0, %v1869_v9 }
  0x35   : > { %1558 = vmatpush3.xpose.msk.msra.mxu0 %vm318_vm0, %v1869_v9  ;;  %1561 = vmatprep.mubr.msk.f32.mxu0 %vm318_vm0, %v304_v18 }
  0x36   : > { %1559 = vmatprep.subr.msk.mxu0 %vm318_vm0, %v1854_v5  ;;  %1542 = vmatprep.subr.mxu1 %v1388_v32 }
  0x37   : > { %1543 = vmatpush3.msra.mxu1 %v1388_v32  ;;  %v1403_v32 = vld [vmem:[%s2112_s3] ss:$0 sm:$0xff] }
  0x38   : > { %1544 = vmatprep.subr.mxu1 %v1387_v33 }
  0x39   : > { %1560 = vmatpush3.xpose.msk.msra.mxu0 %vm318_vm0, %v1854_v5  ;;  %1545 = vmatpush3.msra.mxu1 %v1387_v33 }
  0x3a   : > { %1546 = vmatprep.subr.mxu1 %v1386_v34  ;;  %1588 = vmatprep.subr.mxu0 %v1738_v7 }
  0x3b   : > { %1547 = vmatpush3.msra.mxu1 %v1386_v34 }
  0x3c   : > { %1562 = vmatmul.mubr.msk.f32.vlgmr.msra.gmra.mxu0 %vm318_vm0, %v305_v19  ;;  %1548 = vmatprep.subr.mxu1 %v1385_v35 }
  0x3d   : > { %1564 = vmatprep.mubr.msk.f32.mxu0 %vm318_vm0, %v306_v20  ;;  %1549 = vmatpush3.msra.mxu1 %v1385_v35 }
  0x3e   : > { %1550 = vmatprep.subr.mxu1 %v1384_v36 }
  0x3f   : > { %1551 = vmatpush3.msra.mxu1 %v1384_v36 }
  0x40   : > { %1565 = vmatmul.mubr.msk.f32.gmra.mxu0 %vm318_vm0, %v307_v21  ;;  %1552 = vmatprep.subr.mxu1 %v1383_v37 }
  0x41   : > { %1553 = vmatpush3.msra.mxu1 %v1383_v37  ;;  %1592 = vmatprep.mubr.msk.f32.mxu0 %vm1739_vm2, %v1738_v7 }
  0x42   : > { %1555 = vmatmul.mubr.msk.f32.vlgmr.msra.gmra.mxu1 %vm318_vm0, %v1869_v9  ;;  %1567 = vmatprep.subr.mxu1 %v1738_v7 }
  0x43   : > { %1571 = vmatprep.mubr.msk.f32.mxu1 %vm1739_vm2, %v1738_v7 }
  0xe4   : > { %v1979_v38 = vpop.f32.mrf.mxu0 }
  0xe6   : > { %v1981_v39 = vpop.f32.mrf.mxu0 }
  0xef   : > { %v1518_v6 = vpop.f32.mrf.mxu1 }
  0xf0   : > { %1568 = vmatpush3.msra.mxu1 %v1518_v6 }
  0xf1   : > { %v475_v8 = vpop.f32.mrf.mxu1  ;;  %1569 = vmatprep.subr.mxu1 %v1738_v7 }
  0xf2   : > { %1570 = vmatpush3.msra.mxu1 %v475_v8 }
  0xf3   : > { %1574 = vmatprep.subr.mxu1 %v1738_v7 }
  0xf4   : > { %v1983_v40 = vpop.f32.mrf.mxu0 }
  0xf6   : > { %v1985_v41 = vpop.f32.mrf.mxu0 }
  0xfc   : > { %v1563_v42 = vpop.f32.mrf.mxu0 }
  0xfd   : > { %v753_v43 = vsel %vm749_vm1, %v1563_v42, -inf }
  0xfe   : > { %754 = vmax.xlane.f32.xlu0 %v753_v43  ;;  %v730_v44 = vpop.f32.mrf.mxu0  ;;  %v1113_v43 = vld [vmem:[%s2113_s4 + $0x10] sm:$0xff] }
  0xff   : > { %v750_v46 = vsel %vm749_vm1, %v730_v44, -inf }
 0x100   : > { %v1566_v45 = vpop.f32.mrf.mxu0 }
 0x101   : > { %v759_v49 = vsel %vm749_vm1, %v1566_v45, -inf }
 0x102   : > { %751 = vmax.xlane.f32.xlu0 %v750_v46  ;;  %v740_v47 = vpop.f32.mrf.mxu0  ;;  %v1556_v9 = vpop.f32.mrf.mxu1  ;;  %v1199_v46 = vld [vmem:[%s2115_s6 + $0x18] sm:$0xff] }
 0x103   : > { %v756_v48 = vsel %vm749_vm1, %v740_v47, -inf  ;;  %1589 = vmatpush3.msra.mxu0 %v1556_v9 }
 0x104   : > { %757 = vmax.xlane.f32.xlu1 %v756_v48  ;;  %1590 = vmatprep.subr.mxu0 %v1738_v7  ;;  %v643_v10 = vpop.f32.mrf.mxu1 }
 0x105   : > { %1591 = vmatpush3.msra.mxu0 %v643_v10 }
 0x106   : > { %1606 = vmatprep.subr.mxu0 %v1738_v7 }
 0x108   : > { %760 = vmax.xlane.f32.xlu1 %v759_v49 }
 0x187   : > { %v755_v50 = vpop.xlane.xlu0 %754 }
 0x188   : > { %v763_v51 = vsub.f32 %v1563_v42, %v755_v50  ;;  %v1114_v42 = vld [vmem:[%s2113_s4 + $0x18] sm:$0xff] }
 0x18a   : > { %v768_v52 = vmul.f32 1.442695, %v763_v51 }
 0x18b   : > { %v752_v53 = vpop.xlane.xlu0 %751 }
 0x18c   : > { %1658 = vpow2.f32 %v768_v52  ;;  %v762_v54 = vsub.f32 %v730_v44, %v752_v53  ;;  %v1112_v44 = vld [vmem:[%s2113_s4 + $0x8] sm:$0xff]  ;;  %v1198_v52 = vld [vmem:[%s2115_s6 + $0x10] sm:$0xff] }
 0x18d   : > { %v758_v55 = vpop.xlane.xlu1 %757  ;;  %v1197_v53 = vld [vmem:[%s2115_s6 + $0x8] sm:$0xff] }
 0x18e   : > { %v766_v56 = vmul.f32 1.442695, %v762_v54  ;;  %v764_v57 = vsub.f32 %v740_v47, %v758_v55  ;;  %v1196_v54 = vld [vmem:[%s2115_s6] sm:$0xff] }
 0x18f   : > { %v1404_v55 = vld [vmem:[%s2114_s5] ss:$0 sm:$0xff] }
 0x190   : > { %1660 = vpow2.f32 %v766_v56  ;;  %v770_v58 = vmul.f32 1.442695, %v764_v57 }
 0x191   : > { %v761_v59 = vpop.xlane.xlu1 %760 }
 0x192   : > { %1662 = vpow2.f32 %v770_v58  ;;  %v765_v60 = vsub.f32 %v1566_v45, %v761_v59  ;;  %v1111_v45 = vld [vmem:[%s2113_s4] sm:$0xff] }
 0x194   : > { %v772_v61 = vmul.f32 1.442695, %v765_v60  ;;  %v1406_v60 = vld [vmem:[%s2116_s7] ss:$0 sm:$0xff] }
 0x196   : > { %1664 = vpow2.f32 %v772_v61 }
 0x199   : > { %v1659_v62 = vpop.eup %1658 }
 0x19a   : > { %v777_v63 = vsel %vm749_vm1, %v1659_v62, 0.0 }
 0x19b   : > { %778 = vadd.xlane.f32.xlu0 %v777_v63 }
 0x19d   : > { %v1661_v0 = vpop.eup %1660 }
 0x19e   : > { %v774_v1 = vsel %vm749_vm1, %v1661_v0, 0.0 }
 0x19f   : > { %v1663_v2 = vpop.eup %1662  ;;  %775 = vadd.xlane.f32.xlu1 %v774_v1 }
 0x1a0   : > { %v780_v3 = vsel %vm749_vm1, %v1663_v2, 0.0 }
 0x1a1   : > { %781 = vadd.xlane.f32.xlu0 %v780_v3 }
 0x1a3   : > { %v1665_v4 = vpop.eup %1664 }
 0x1a4   : > { %v783_v5 = vsel %vm749_vm1, %v1665_v4, 0.0 }
 0x1a5   : > { %784 = vadd.xlane.f32.xlu1 %v783_v5 }
 0x224   : > { %v779_v11 = vpop.xlane.xlu0 %778 }
 0x225   : > { %1666 = vrcp.f32 %v779_v11 }
 0x228   : > { %v776_v12 = vpop.xlane.xlu1 %775 }
 0x229   : > { %1668 = vrcp.f32 %v776_v12 }
 0x22a   : > { %v782_v13 = vpop.xlane.xlu0 %781 }
 0x22b   : > { %1670 = vrcp.f32 %v782_v13 }
 0x22e   : > { %v785_v14 = vpop.xlane.xlu1 %784 }
 0x22f   : > { %1672 = vrcp.f32 %v785_v14 }
 0x232   : > { %v1667_v15 = vpop.eup %1666 }
 0x233   : > { %v791_v16 = vmul.f32 %v1667_v15, %v1659_v62 }
 0x235   : > { %1572 = vmatmul.mubr.msk.f32.vlgmr.msra.gmra.mxu1 %vm749_vm1, %v791_v16 }
 0x236   : > { %v1669_v17 = vpop.eup %1668  ;;  %1575 = vmatpush3.msra.mxu1 %v1979_v38  ;;  %1578 = vmatprep.mubr.msk.f32.mxu1 %vm1739_vm2, %v1738_v7 }
 0x237   : > { %1576 = vmatprep.subr.mxu1 %v1738_v7  ;;  %v790_v18 = vmul.f32 %v1669_v17, %v1661_v0 }
 0x238   : > { %v1671_v19 = vpop.eup %1670  ;;  %1577 = vmatpush3.msra.mxu1 %v1981_v39 }
 0x239   : > { %1581 = vmatprep.subr.mxu1 %v1738_v7  ;;  %1579 = vmatmul.mubr.msk.f32.vlgmr.msra.gmra.mxu1 %vm749_vm1, %v790_v18  ;;  %v792_v20 = vmul.f32 %v1671_v19, %v1663_v2 }
 0x23a   : > { %1582 = vmatpush3.msra.mxu1 %v1983_v40  ;;  %1585 = vmatprep.mubr.msk.f32.mxu1 %vm1739_vm2, %v1738_v7 }
 0x23b   : > { %1583 = vmatprep.subr.mxu1 %v1738_v7 }
 0x23c   : > { %v1673_v21 = vpop.eup %1672  ;;  %1584 = vmatpush3.msra.mxu1 %v1985_v41 }
 0x23d   : > { %v793_v22 = vmul.f32 %v1673_v21, %v1665_v4  ;;  %1586 = vmatmul.mubr.msk.f32.vlgmr.msra.gmra.mxu1 %vm749_vm1, %v792_v20  ;;  %1595 = vmatprep.subr.mxu1 %v1738_v7 }
 0x23e   : > { %1603 = vmatprep.mubr.msk.f32.mxu1 %vm1739_vm2, %v1738_v7  ;;  %1596 = vmatpush3.msra.mxu1 %v1114_v42 }
 0x23f   : > { %1593 = vmatmul.mubr.msk.f32.vlgmr.msra.gmra.mxu0 %vm749_vm1, %v793_v22  ;;  %1597 = vmatprep.subr.mxu1 %v1738_v7 }
 0x240   : > { %1614 = vmatprep.mubr.msk.f32.mxu0 %vm1739_vm2, %v1738_v7  ;;  %1598 = vmatpush3.msra.mxu1 %v1113_v43 }
 0x241   : > { %1599 = vmatprep.subr.mxu1 %v1738_v7  ;;  %1607 = vmatpush3.msra.mxu0 %v1199_v46 }
 0x242   : > { %1600 = vmatpush3.msra.mxu1 %v1112_v44  ;;  %1608 = vmatprep.subr.mxu0 %v1738_v7 }
 0x243   : > { %1601 = vmatprep.subr.mxu1 %v1738_v7  ;;  %1609 = vmatpush3.msra.mxu0 %v1198_v52 }
 0x244   : > { %1602 = vmatpush3.msra.mxu1 %v1111_v45  ;;  %1610 = vmatprep.subr.mxu0 %v1738_v7 }
 0x245   : > { %1611 = vmatpush3.msra.mxu0 %v1197_v53 }
 0x246   : > { %1612 = vmatprep.subr.mxu0 %v1738_v7 }
 0x247   : > { %1613 = vmatpush3.msra.mxu0 %v1196_v54 }
 0x2f5   : > { %v863_v23 = vpop.f32.mrf.mxu1 }
 0x2f7   : > { %v1573_v24 = vpop.f32.mrf.mxu1 }
 0x2f9   : > { %v936_v25 = vpop.f32.mrf.mxu1 }
 0x2fa   : > { %v937_v27 = vadd.f32 %v936_v25, %v863_v23 }
 0x2fb   : > { %v1580_v26 = vpop.f32.mrf.mxu1 }
 0x2fd   : > { %v1009_v28 = vpop.f32.mrf.mxu1 }
 0x2fe   : > { %v1013_v29 = vadd.f32 %v1009_v28, %v937_v27 }
 0x2ff   : > { %v1587_v30 = vpop.f32.mrf.mxu1  ;;  %v1083_v31 = vpop.f32.mrf.mxu0 }
 0x300   : > { %v1087_v33 = vadd.f32 %v1083_v31, %v1013_v29 }
 0x301   : > { %v1594_v34 = vpop.f32.mrf.mxu0 }
 0x302   : > { %v1095_v35 = vadd.f32 %v1403_v32, %v1087_v33 }
 0x304   : > { %v1097_v36 = vsel %vm1096_vm3, %v1095_v35, 0.0 }
 0x305   : > { %1098 = vadd.xlane.f32.xlu0 %v1097_v36 }
 0x38e   : > { %v1099_v37 = vpop.xlane.xlu0 %1098 }
 0x38f   : > { %v1101_v38 = vmul.f32 0.03125, %v1099_v37 }
 0x391   : > { %v1102_v39 = vsub.f32 %v1095_v35, %v1101_v38 }
 0x393   : > { %v1103_v40 = vmul.f32 %v1102_v39, %v1102_v39 }
 0x395   : > { %v1104_v41 = vsel %vm1096_vm3, %v1103_v40, 0.0 }
 0x396   : > { %1105 = vadd.xlane.f32.xlu1 %v1104_v41 }
 0x41f   : > { %v1106_v47 = vpop.xlane.xlu1 %1105 }
 0x420   : > { %v1107_v48 = vmul.f32 0.03125, %v1106_v47 }
 0x422   : > { %v1108_v49 = vadd.f32 1e-05, %v1107_v48 }
 0x424   : > { %1674 = vrsqrt.f32 %v1108_v49 }
 0x431   : > { %v1675_v50 = vpop.eup %1674 }
 0x432   : > { %v1110_v51 = vmul.f32 %v1675_v50, %v1102_v39 }
 0x434   : > { %1604 = vmatmul.mubr.msk.f32.vlgmr.msra.gmra.mxu1 %vm1096_vm3, %v1110_v51 }
 0x4f4   : > { %v1191_v56 = vpop.f32.mrf.mxu1 }
 0x4f5   : > { %v1192_v57 = vadd.f32 %v1404_v55, %v1191_v56 }
 0x4f6   : > { %v1605_v58 = vpop.f32.mrf.mxu1 }
 0x4f7   : > { %v1195_v59 = vmax.f32 %v1192_v57, 0.0 }
 0x4f9   : > { %1615 = vmatmul.mubr.msk.f32.vlgmr.msra.gmra.mxu0 %vm1096_vm3, %v1195_v59 }
 0x5b9   : > { %v1276_v61 = vpop.f32.mrf.mxu0 }
 0x5ba   : > { %v1277_v62 = vadd.f32 %v1406_v60, %v1276_v61 }
 0x5bb   : > { %v1616_v63 = vpop.f32.mrf.mxu0 }
 0x5bc   : > { %1280 = vst.msk [vmem:[%s298_s12] sm:$0xff] %vm1096_vm3, %v1277_v62 }
 0x5bd   : > { %1689 = shalt.err (!%p1686_p3)
}
 0x5be   : > { %s1690_s25 = scalar_lea.hbm %s2073_s19, 128  ;;  %s1694_s10 = scalar_lea.hbm %s2117_s8, 256 }
 0x5bf   : > { %p1691_p4 = scmp.ne.s32.totalorder %s2073_s19, %s1690_s25  ;;  %p1695_p9 = scmp.lt.s32.totalorder %s2073_s19, %s2117_s8 }
 0x5c0   : > { %p1696_p10 = scmp.lt.s32.totalorder %s1694_s10, %s1690_s25 }
 0x5c1   : > { %p1692_p7 = pnand %p1691_p4, %p1824_p5 }
 0x5c2   : > { %p1697_p11 = por %p1696_p10, %p1695_p9 }
 0x5c3   : > { %p1693_p8 = pneg %p1692_p7 }
 0x5c5   : > { %p1698_p12 = pnand %p1697_p11, %p1693_p8 }
 0x5c7   : > { %1701 = shalt.err (!%p1698_p12)
}
 0x5c8   : > { %1617 = dma.vmem_to_hbm [thread:$0]  (%p1824_p5), %s1296_s17, 128, %s2073_s19, %s1282_s20  }
 0x5c9 PF: > { %p1623_p13 = scmp.ge.s32.totalorder %s1736_s30, 2  ;;  %s1307_s13 = sand.u32 1, %s1724_s27  }
 0x5ca   : > { %s1308_s21 = scalar_lea.sflag [#allocation3], %s1307_s13 }
 0x5cb   : > { %p1620_p0 = pnand %p1623_p13, %p1828_p6 }
 0x5cd   : > { %p1621_p1 = pneg %p1620_p0 }
 0x5cf   : > { %1719 = dma.done.wait (%p1621_p1), %s1308_s21, 128  }
 0x5d0   : > { %1721 = vsyncadd (%p1621_p1), %s1308_s21, 4294967168  ;;  %p18_p2 = scmp.ge.s32.totalorder %s1811_s11, 4   ;;  %s2120_s27 = smov %s1728_s28 }
 0x5d1   : > { %s2121_s28 = smov %s1732_s29  ;;  %s2122_s29 = smov %s1822_s14 }
 0x5d2   : > { %s2123_s30 = smov %s1811_s11  ;;  %20 = sbr.rel (!%p18_p2) target bundleno = 3 (0x3), region = 90 }
 0x5d7   :  { %1313 = vsyncpa [#allocation3], 1 }
 0x5d8   :  { %1315 = vsyncpa [#allocation3 + $0x1], 1 }

</bundles_post_ra>
